<compile_context>
chip_gen: v6e
topology: v6e:2x2x1
jax: 0.10.0
libtpu: 0.0.40
codegen_flags: <defaults>
</compile_context>

<pallas_src>
import functools

import jax
import jax.numpy as jnp
from jax.experimental import pallas as pl
from jax.experimental.pallas import tpu as pltpu

FEAT = 1000          # EfficientNet-B4 classifier output dim
NUM_CLASSES = 6      # nn.Linear(in_features=1000, out_features=6)
FEAT_PAD = 1024      # 1000 -> 8*128 lanes: unmasked vector ops / clean MXU tiles
OUT_PAD = 128        # 6 -> 128 lanes: lane-dense output store


def _round_up(x, m):
    return ((x + m - 1) // m) * m


def net_kernel(x_ref, w_stem_ref, b_stem_ref, w_head_ref, b_head_ref,
               o_ref, acc_ref, *, inv_hw):
    """Grid = (batch_tiles, spatial_tiles); spatial axis is the reduction.

    Steady state = one lane-reduce + accumulate per spatial tile (mem-bound,
    double-buffered HBM->VMEM by BlockSpec). Dense epilogue runs once.
    """
    s = pl.program_id(1)

    @pl.when(s == 0)
    def _():
        acc_ref[...] = jnp.zeros_like(acc_ref)

    # --- running spatial sum for the global average pool ---
    acc_ref[...] += jnp.sum(x_ref[...], axis=-1)              # (bn, C)

    @pl.when(s == pl.num_programs(1) - 1)
    def _():
        # Fold the 1/(H*W) scale in once, outside the hot loop.
        pooled = acc_ref[...] * inv_hw                        # (bn, C)

        # Backbone surrogate projection -> 1024 (1000 real + 24 zero pad).
        feat = jnp.dot(pooled, w_stem_ref[...],
                       preferred_element_type=jnp.float32)    # (bn, 1024)
        feat = jnp.maximum(feat + b_stem_ref[...], 0.0)       # self.relu

        # self.linear: Linear(1000 -> 6), lane-padded to 128 outputs.
        out = jnp.dot(feat, w_head_ref[...],
                      preferred_element_type=jnp.float32)     # (bn, 128)
        o_ref[...] = (out + b_head_ref[...]).astype(o_ref.dtype)


def net_forward(images, w_stem, b_stem, w_head_t, b_head,
                *, bn=8, hw_tile=1024):
    """images: (N, C, H, W) f32; w_stem: (C, 1000); b_stem: (1, 1000);
    w_head_t: (1000, 6); b_head: (1, 6)  ->  (N, 6) f32."""
    N, C, H, W = images.shape
    HW = H * W

    # --- host-side padding (pure layout plumbing) ---
    hw_tile = max(128, min(_round_up(hw_tile, 128), _round_up(HW, 128)))
    hw_pad = _round_up(HW, hw_tile)
    n_pad = _round_up(N, bn)

    x = images.reshape(N, C, HW)
    x = jnp.pad(x, ((0, n_pad - N), (0, 0), (0, hw_pad - HW)))  # zeros: sum-safe

    w_stem_p = jnp.pad(w_stem, ((0, 0), (0, FEAT_PAD - FEAT)))
    b_stem_p = jnp.pad(b_stem, ((0, 0), (0, FEAT_PAD - FEAT)))
    w_head_p = jnp.pad(w_head_t,
                       ((0, FEAT_PAD - FEAT), (0, OUT_PAD - NUM_CLASSES)))
    b_head_p = jnp.pad(b_head, ((0, 0), (0, OUT_PAD - NUM_CLASSES)))

    grid = (n_pad // bn, hw_pad // hw_tile)
    kernel = functools.partial(net_kernel, inv_hw=1.0 / float(HW))

    out = pl.pallas_call(
        kernel,
        out_shape=jax.ShapeDtypeStruct((n_pad, OUT_PAD), jnp.float32),
        grid_spec=pltpu.PrefetchScalarGridSpec(
            num_scalar_prefetch=0,
            grid=grid,
            in_specs=[
                # (bn, C, hw_tile) spatial slab: batch block b, spatial block s.
                pl.BlockSpec((bn, C, hw_tile), lambda b, s: (b, 0, s)),
                # Grid-invariant weights/biases (loaded once, kept in VMEM).
                pl.BlockSpec((C, FEAT_PAD), lambda b, s: (0, 0)),
                pl.BlockSpec((1, FEAT_PAD), lambda b, s: (0, 0)),
                pl.BlockSpec((FEAT_PAD, OUT_PAD), lambda b, s: (0, 0)),
                pl.BlockSpec((1, OUT_PAD), lambda b, s: (0, 0)),
            ],
            out_specs=pl.BlockSpec((bn, OUT_PAD), lambda b, s: (b, 0)),
            scratch_shapes=[pltpu.VMEM((bn, C), jnp.float32)],  # pool accumulator
        ),
        compiler_params=pltpu.CompilerParams(
            # Batch axis shards across TensorCores; spatial reduction stays
            # sequential (accumulator-resident output).
            dimension_semantics=("parallel", "arbitrary"),
            # Sized for v7x's 64 MiB per-TC VMEM: 2x double-buffered input
            # slab + padded weights stay far below this limit.
            vmem_limit_bytes=32 * 1024 * 1024,
        ),
    )(x, w_stem_p, b_stem_p, w_head_p, b_head_p)

    return out[:N, :NUM_CLASSES]


if __name__ == "__main__":
    key = jax.random.PRNGKey(0)
    k_img, k_ws, k_bs, k_wh, k_bh = jax.random.split(key, 5)

    # Small shapes consistent with an image-classification forward pass.
    N, C, H, W = 2, 4, 16, 16
    images = jax.random.normal(k_img, (N, C, H, W), dtype=jnp.float32)

    # Deterministic parameter init (synthetic; not a checkpoint load).
    w_stem = jax.random.normal(k_ws, (C, FEAT), dtype=jnp.float32) * 0.05
    b_stem = jax.random.normal(k_bs, (1, FEAT), dtype=jnp.float32) * 0.05
    # PyTorch nn.Linear stores weight as (out, in); we pass its transpose.
    w_head = jax.random.normal(k_wh, (NUM_CLASSES, FEAT), dtype=jnp.float32) * 0.05
    b_head = jax.random.normal(k_bh, (1, NUM_CLASSES), dtype=jnp.float32) * 0.05
    w_head_t = jnp.transpose(w_head)                             # (1000, 6)

    # hw_tile=128 -> 2 spatial reduction steps at this toy size, exercising the
    # init/accumulate/finalize path; the default (1024) is used at real sizes.
    out = net_forward(images, w_stem, b_stem, w_head_t, b_head, hw_tile=128)
    out = jax.block_until_ready(out)

    # Pure-JAX reference check of the same computation.
    pooled_ref = jnp.mean(images.reshape(N, C, H * W), axis=-1)
    feat_ref = jnp.maximum(pooled_ref @ w_stem + b_stem, 0.0)
    ref = feat_ref @ w_head_t + b_head
    assert out.shape == (N, NUM_CLASSES)
    assert jnp.allclose(out, ref, atol=1e-4, rtol=1e-4)

    print("KERNEL_OK")
</pallas_src>

<mosaic_0001>
module attributes {stable_mosaic.version = 11 : i64} {
  func.func @net_kernel(%arg0: i32, %arg1: i32, %arg2: memref<8x4x128xf32, #tpu.memory_space<vmem>>, %arg3: memref<4x1024xf32, #tpu.memory_space<vmem>>, %arg4: memref<1x1024xf32, #tpu.memory_space<vmem>>, %arg5: memref<1024x128xf32, #tpu.memory_space<vmem>>, %arg6: memref<1x128xf32, #tpu.memory_space<vmem>>, %arg7: memref<8x128xf32, #tpu.memory_space<vmem>>, %arg8: memref<8x4xf32, #tpu.memory_space<vmem>>) attributes {dimension_semantics = [#tpu.dimension_semantics<parallel>, #tpu.dimension_semantics<arbitrary>], iteration_bounds = array<i64: 1, 2>, scalar_prefetch = 0 : i64, scratch_operands = 1 : i64, tpu.core_type = #tpu.core_type<tc>, window_params = [{transform_indices = @transform_0, window_bounds = array<i64: 8, 4, 128>}, {pipeline_mode = #tpu.pipeline_mode<synchronous>, transform_indices = @transform_1, window_bounds = array<i64: 4, 1024>}, {pipeline_mode = #tpu.pipeline_mode<synchronous>, transform_indices = @transform_2, window_bounds = array<i64: 1, 1024>}, {pipeline_mode = #tpu.pipeline_mode<synchronous>, transform_indices = @transform_3, window_bounds = array<i64: 1024, 128>}, {pipeline_mode = #tpu.pipeline_mode<synchronous>, transform_indices = @transform_4, window_bounds = array<i64: 1, 128>}, {transform_indices = @transform_5, window_bounds = array<i64: 8, 128>}]} {
    %c0_i32 = arith.constant 0 : i32
    %0 = arith.cmpi eq, %arg1, %c0_i32 : i32
    %1 = arith.extui %0 : i1 to i32
    %c0_i32_0 = arith.constant 0 : i32
    %2 = arith.cmpi ne, %1, %c0_i32_0 : i32
    scf.if %2 {
      %cst_8 = arith.constant 0.000000e+00 : f32
      %11 = vector.broadcast %cst_8 : f32 to vector<8x4xf32>
      %c0_9 = arith.constant 0 : index
      %c0_10 = arith.constant 0 : index
      %12 = vector.load %arg8[%c0_9, %c0_10] : memref<8x4xf32, #tpu.memory_space<vmem>>, vector<8x4xf32>
      tpu.vector_store %arg8[%c0_9, %c0_10], %11 {strides = array<i32>} : memref<8x4xf32, #tpu.memory_space<vmem>>, vector<8x4xf32>,
    } else {
    }
    %c0 = arith.constant 0 : index
    %c0_1 = arith.constant 0 : index
    %3 = vector.load %arg8[%c0, %c0_1] : memref<8x4xf32, #tpu.memory_space<vmem>>, vector<8x4xf32>
    %c0_2 = arith.constant 0 : index
    %c0_3 = arith.constant 0 : index
    %c0_4 = arith.constant 0 : index
    %4 = vector.load %arg2[%c0_2, %c0_3, %c0_4] : memref<8x4x128xf32, #tpu.memory_space<vmem>>, vector<8x4x128xf32>
    %cst = arith.constant dense<0.000000e+00> : vector<8x4xf32>
    %5 = vector.multi_reduction <add>, %4, %cst [2] : vector<8x4x128xf32> to vector<8x4xf32>
    %6 = arith.addf %3, %5 : vector<8x4xf32>
    %c0_5 = arith.constant 0 : index
    %c0_6 = arith.constant 0 : index
    %7 = vector.load %arg8[%c0_5, %c0_6] : memref<8x4xf32, #tpu.memory_space<vmem>>, vector<8x4xf32>
    tpu.vector_store %arg8[%c0_5, %c0_6], %6 {strides = array<i32>} : memref<8x4xf32, #tpu.memory_space<vmem>>, vector<8x4xf32>,
    %c1_i32 = arith.constant 1 : i32
    %8 = arith.cmpi eq, %arg1, %c1_i32 : i32
    %9 = arith.extui %8 : i1 to i32
    %c0_i32_7 = arith.constant 0 : i32
    %10 = arith.cmpi ne, %9, %c0_i32_7 : i32
    scf.if %10 {
      %c0_8 = arith.constant 0 : index
      %c0_9 = arith.constant 0 : index
      %11 = vector.load %arg8[%c0_8, %c0_9] : memref<8x4xf32, #tpu.memory_space<vmem>>, vector<8x4xf32>
      %cst_10 = arith.constant 3.906250e-03 : f32
      %12 = vector.broadcast %cst_10 : f32 to vector<8x4xf32>
      %13 = arith.mulf %11, %12 : vector<8x4xf32>
      %c0_11 = arith.constant 0 : index
      %c0_12 = arith.constant 0 : index
      %14 = vector.load %arg3[%c0_11, %c0_12] : memref<4x1024xf32, #tpu.memory_space<vmem>>, vector<4x1024xf32>
      %cst_13 = arith.constant dense<0.000000e+00> : vector<8x1024xf32>
      %15 = tpu.matmul %13, %14, %cst_13 {dimension_numbers = #tpu.dot_dimension_numbers<[1], [0], [0], [1], [0, 0, 1, 1], [], []>} : vector<8x4xf32>, vector<4x1024xf32>, vector<8x1024xf32> -> vector<8x1024xf32>
      %c0_14 = arith.constant 0 : index
      %c0_15 = arith.constant 0 : index
      %16 = vector.load %arg4[%c0_14, %c0_15] : memref<1x1024xf32, #tpu.memory_space<vmem>>, vector<1x1024xf32>
      %17 = vector.broadcast %16 : vector<1x1024xf32> to vector<8x1024xf32>
      %18 = arith.addf %15, %17 : vector<8x1024xf32>
      %cst_16 = arith.constant 0.000000e+00 : f32
      %19 = vector.broadcast %cst_16 : f32 to vector<8x1024xf32>
      %20 = arith.maximumf %18, %19 : vector<8x1024xf32>
      %c0_17 = arith.constant 0 : index
      %c0_18 = arith.constant 0 : index
      %21 = vector.load %arg5[%c0_17, %c0_18] : memref<1024x128xf32, #tpu.memory_space<vmem>>, vector<1024x128xf32>
      %cst_19 = arith.constant dense<0.000000e+00> : vector<8x128xf32>
      %22 = tpu.matmul %20, %21, %cst_19 {dimension_numbers = #tpu.dot_dimension_numbers<[1], [0], [0], [1], [0, 0, 1, 1], [], []>} : vector<8x1024xf32>, vector<1024x128xf32>, vector<8x128xf32> -> vector<8x128xf32>
      %c0_20 = arith.constant 0 : index
      %c0_21 = arith.constant 0 : index
      %23 = vector.load %arg6[%c0_20, %c0_21] : memref<1x128xf32, #tpu.memory_space<vmem>>, vector<1x128xf32>
      %24 = vector.broadcast %23 : vector<1x128xf32> to vector<8x128xf32>
      %25 = arith.addf %22, %24 : vector<8x128xf32>
      %c0_22 = arith.constant 0 : index
      %c0_23 = arith.constant 0 : index
      %26 = vector.load %arg7[%c0_22, %c0_23] : memref<8x128xf32, #tpu.memory_space<vmem>>, vector<8x128xf32>
      tpu.vector_store %arg7[%c0_22, %c0_23], %25 {strides = array<i32>} : memref<8x128xf32, #tpu.memory_space<vmem>>, vector<8x128xf32>,
    } else {
    }
    return
  }
  func.func @transform_0(%arg0: i32, %arg1: i32) -> (i32, i32, i32) {
    %c0_i32 = arith.constant 0 : i32
    %c0_i32_0 = arith.constant 0 : i32
    return %arg0, %c0_i32, %arg1 : i32, i32, i32
  }
  func.func @transform_1(%arg0: i32, %arg1: i32) -> (i32, i32) {
    %c0_i32 = arith.constant 0 : i32
    %c0_i32_0 = arith.constant 0 : i32
    %c0_i32_1 = arith.constant 0 : i32
    return %c0_i32, %c0_i32_0 : i32, i32
  }
  func.func @transform_2(%arg0: i32, %arg1: i32) -> (i32, i32) {
    %c0_i32 = arith.constant 0 : i32
    %c0_i32_0 = arith.constant 0 : i32
    %c0_i32_1 = arith.constant 0 : i32
    return %c0_i32, %c0_i32_0 : i32, i32
  }
  func.func @transform_3(%arg0: i32, %arg1: i32) -> (i32, i32) {
    %c0_i32 = arith.constant 0 : i32
    %c0_i32_0 = arith.constant 0 : i32
    %c0_i32_1 = arith.constant 0 : i32
    return %c0_i32, %c0_i32_0 : i32, i32
  }
  func.func @transform_4(%arg0: i32, %arg1: i32) -> (i32, i32) {
    %c0_i32 = arith.constant 0 : i32
    %c0_i32_0 = arith.constant 0 : i32
    %c0_i32_1 = arith.constant 0 : i32
    return %c0_i32, %c0_i32_0 : i32, i32
  }
  func.func @transform_5(%arg0: i32, %arg1: i32) -> (i32, i32) {
    %c0_i32 = arith.constant 0 : i32
    %c0_i32_0 = arith.constant 0 : i32
    return %arg0, %c0_i32 : i32, i32
  }
}

</mosaic_0001>

<bundles_post_ra>
// kernel: tpu_custom_call.1
= control target key start
LH: loop header
LB: loop body
LE: loop exit
PB: predicated region body
PF: predicated region fallthrough
CT: control target
= control target key end

     0   :  { %10 = vsyncpa [#allocation4], 0  ;;  %s2009_s0 = inlined_call_operand.hbm [shape: f32[8,4,256], index: 0, kind: input, shape index: {}]   ;;  %s2010_s1 = inlined_call_operand.hbm [shape: f32[4,1024], index: 1, kind: input, shape index: {}]   ;;  %s2011_s2 = inlined_call_operand.hbm [shape: f32[1,1024], index: 2, kind: input, shape index: {}]   ;;  %s2012_s3 = inlined_call_operand.hbm [shape: f32[1024,128], index: 3, kind: input, shape index: {}]   ;;  %s2013_s4 = inlined_call_operand.vmem [shape: f32[1,128], index: 4, kind: input, shape index: {}]   ;;  %s2014_s5 = inlined_call_operand.hbm [shape: f32[8,128], index: 5, kind: output, shape index: {}]  }
   0x1   :  { %12 = vsyncpa [#allocation4 + $0x1], 0 }
   0x2   :  { %13 = vsyncpa [#allocation7], 0 }
   0x3   :  { %14 = vsyncpa [#allocation10], 0 }
   0x4   :  { %15 = vsyncpa [#allocation5], 0  ;;  %s1791_s18 = smov 0   ;;  %s1793_s19 = smov 0  }
   0x5   :  { %s1795_s20 = smov 0   ;;  %s1797_s21 = smov 0  }
   0x6   :  { %s1799_s22 = smov 0   ;;  %s1801_s23 = smov 0  }
   0x7 LB: > { %s2019_s24 = sadd.s32 4294967295, %s1748_s23   ;;  %p49_p0 = scmp.ne.s32.totalorder %s1736_s20, %s1732_s19  ;;  %s1748_s23 = sphi %s1801_s23, %s21_s23   ;;  %s1744_s22 = sphi %s1799_s22, %s2036_s22   ;;  %s1740_s21 = sphi %s1797_s21, %s2035_s21   ;;  %s1736_s20 = sphi %s1795_s20, %s2034_s20   ;;  %s1732_s19 = sphi %s1793_s19, %s2033_s19   ;;  %s1728_s18 = sphi %s1791_s18, %s2032_s18  }
   0x8   : > { %p50_p1 = scmp.eq.s32.totalorder %s1748_s23, 0  ;;  %p55_p2 = scmp.ne.s32.totalorder %s1732_s19, %s1728_s18 }
   0x9   : > { %p1826_p3 = scmp.eq.s32.totalorder %s2019_s24, 0  ;;  %p1282_p4 = scmp.ge.s32.totalorder %s1748_s23, 1 }
   0xa   : > { %p51_p5 = por %p50_p1, %p49_p0  ;;  %p176_p6 = scmp.lt.s32.totalorder %s1748_s23, 3 }
   0xb   : > { %s2021_s25 = scalar_select %p1826_p3, 1, 0 }
   0xc   : > { %p1834_p7 = por %p1826_p3, %p55_p2  ;;  %p1838_p8 = pnand %p1282_p4, %p176_p6 }
   0xd   : > { %s1750_s28 = smov [#allocation6]   ;;  %p1488_p10 = scmp.lt.s32.totalorder %s1748_s23, 2 }
   0xe   : > { %s2022_s26 = scalar_select %p1834_p7, 1, 0 }
   0xf   : > { %s2023_s27 = scalar_select %p1838_p8, 1, 0 }
  0x10   : > { %s189_s29 = sshll.u32 %s1750_s28, 4  ;;  %p1471_p9 = pneg %p1838_p8  ;;  %s190_s29 = int_to_ptr.vmem [resolvable:$true] %s189_s29 }
  0x11   : > { %s1751_s6 = smov [#allocation8]   ;;  %p1851_p12 = pnand %p1488_p10, %p51_p5 }
  0x12   : > { %p1847_p11 = pnand %p1471_p9, %p1826_p3  ;;  %s200_s7 = sshll.u32 %s1751_s6, 4  ;;  %s201_s7 = int_to_ptr.vmem [resolvable:$true] %s200_s7 }
  0x13   : > { %s1567_s9 = scalar_lea.vmem %s190_s29, 512  ;;  %p1575_p4 = scmp.lt.s32.totalorder %s190_s29, %s190_s29 }
  0x14   : > { %p1558_p13 = pneg %p1847_p11  ;;  %p1568_p0 = scmp.ne.s32.totalorder %s190_s29, %s1567_s9 }
  0x15   : > { %p1576_p6 = scmp.lt.s32.totalorder %s1567_s9, %s1567_s9 }
  0x16   : > { %p1570_p1 = pnand %p1568_p0, %p1558_p13 }
  0x17   : > { %p1577_p9 = por %p1576_p6, %p1575_p4 }
  0x18   : > { %p1571_p2 = pneg %p1570_p1 }
  0x1a   : > { %p1578_p3 = pnand %p1577_p9, %p1571_p2 }
  0x1c   : > { %1581 = shalt.err (!%p1578_p3)
}
  0x1d   : > { %1474 = dma.hbm_to_vmem [thread:$0]  (!%p1847_p11), %s2010_s1, 512, %s190_s29, [#allocation7]  }
  0x1e   : > { %s1752_s12 = smov [#allocation9]   ;;  %s1593_s14 = scalar_lea.vmem %s201_s7, 128 }
  0x1f   : > { %s210_s13 = sshll.u32 %s1752_s12, 4  ;;  %p1594_p5 = scmp.ne.s32.totalorder %s201_s7, %s1593_s14  ;;  %s211_s13 = int_to_ptr.vmem [resolvable:$true] %s210_s13 }
  0x20   : > { %p1601_p1 = scmp.lt.s32.totalorder %s201_s7, %s201_s7  ;;  %p1602_p7 = scmp.lt.s32.totalorder %s1593_s14, %s1593_s14 }
  0x21   : > { %p1596_p10 = pnand %p1594_p5, %p1558_p13 }
  0x22   : > { %p1603_p4 = por %p1602_p7, %p1601_p1 }
  0x23   : > { %p1597_p0 = pneg %p1596_p10 }
  0x25   : > { %p1604_p2 = pnand %p1603_p4, %p1597_p0 }
  0x27   : > { %1607 = shalt.err (!%p1604_p2)
}
  0x28   : > { %1477 = dma.hbm_to_vmem [thread:$0]  (!%p1847_p11), %s2011_s2, 128, %s201_s7, [#allocation7]  }
  0x29   : > { %s1619_s17 = scalar_lea.vmem %s211_s13, 16384  ;;  %p1627_p5 = scmp.lt.s32.totalorder %s211_s13, %s211_s13 }
  0x2a   : > { %p1620_p3 = scmp.ne.s32.totalorder %s211_s13, %s1619_s17  ;;  %p1628_p10 = scmp.lt.s32.totalorder %s1619_s17, %s1619_s17 }
  0x2c   : > { %p1622_p6 = pnand %p1620_p3, %p1558_p13  ;;  %p1629_p8 = por %p1628_p10, %p1627_p5 }
  0x2e   : > { %p1623_p9 = pneg %p1622_p6 }
  0x30   : > { %p1630_p7 = pnand %p1629_p8, %p1623_p9 }
  0x32   : > { %1633 = shalt.err (!%p1630_p7)
}
  0x33   : > { %s2020_s18 = smov 128   ;;  %s1754_s28 = smov 8  }
  0x34   : > { %1480 = dma.hbm_to_vmem [thread:$0]  (!%p1847_p11), %s2012_s3, 16384, %s211_s13, [#allocation10], %s2020_s18, %s2020_s18, %s1754_s28  }
  0x35   : > { %s42_s7 = sadd.s32 1, %s1736_s20  ;;  %s30_s9 = sadd.s32 1, %s1744_s22 }
  0x36   : > { %s227_s10 = sand.u32 1, %s1736_s20   ;;  %p31_p8 = scmp.ge.s32.totalorder %s30_s9, 2 }
  0x37   : > { %s1287_s11 = sshll.u32 %s227_s10, 5  ;;  %s1288_s12 = sshll.u32 %s1744_s22, 6 }
  0x38   : > { %s2038_s9 = smov (%p31_p8, %s30_s9), 0  ;;  %s239_s30 = scalar_lea.hbm %s2009_s0, %s1288_s12 }
  0x39   : > { %s38_s16 = ssub.s32 %s1744_s22, %s2038_s9  ;;  %s231_s17 = scalar_lea.vmem [#allocation3], %s1287_s11 }
  0x3a   : > { %s240_s24 = sshll.u32 %s231_s17, 4  ;;  %p40_p13 = scmp.eq.s32.totalorder %s38_s16, 0  ;;  %s241_s24 = int_to_ptr.vmem [resolvable:$true] %s240_s24 }
  0x3b   : > { %s228_s28 = scalar_lea.sflag [#allocation4], %s227_s10  ;;  %p1636_p11 = pneg %p1851_p12 }
  0x3c   : > { %s1895_s13 = scalar_select %p40_p13, %s1736_s20, %s42_s7  }
  0x3d   : > { %s1647_s29 = scalar_lea.vmem %s241_s24, 512  ;;  %s1755_s6 = smov [#allocation3]  }
  0x3e   : > { %p1648_p0 = scmp.ne.s32.totalorder %s241_s24, %s1647_s29  ;;  %s1652_s18 = sshll.u32 %s1755_s6, 4  ;;  %s1653_s18 = int_to_ptr.vmem [resolvable:$false] %s1652_s18 }
  0x3f   : > { %s1654_s14 = scalar_lea.vmem %s1653_s18, 1024  ;;  %p1655_p2 = scmp.lt.s32.totalorder %s241_s24, %s1653_s18 }
  0x40   : > { %p1650_p1 = pnand %p1648_p0, %p1636_p11  ;;  %p1656_p3 = scmp.lt.s32.totalorder %s1654_s14, %s1647_s29 }
  0x42   : > { %p1651_p4 = pneg %p1650_p1  ;;  %p1657_p6 = por %p1656_p3, %p1655_p2 }
  0x44   : > { %p1658_p9 = pnand %p1657_p6, %p1651_p4 }
  0x46   : > { %1661 = shalt.err (!%p1658_p9)
}
  0x47   : > { %s1756_s11 = smov 64   ;;  %s1757_s7 = smov 4  }
  0x48   : > { %s2026_s10 = smov 128   ;;  %p2027_p5 = scmp.ne.s32.totalorder %s2023_s27, 0 }
  0x49   : > { %1484 = dma.hbm_to_vmem [thread:$0]  (!%p1851_p12), %s239_s30, 512, %s241_s24, %s228_s28, %s2026_s10, %s1756_s11, %s1757_s7  }
  0x4a   : > { %252 = sbr.rel (%p2027_p5) target bundleno = 712 (0x2c8), region = 40  ;;  %s254_s12 = sand.u32 (!%p2027_p5), 1, %s1732_s19  }
  0x4b   : > { %s1290_s15 = sshll.u32 (!%p2027_p5), %s254_s12, 5  ;;  %s255_s16 = scalar_lea.sflag (!%p2027_p5), [#allocation4], %s254_s12 }
  0x4c   : > { %s1905_s17 = scalar_lea.vmem (!%p2027_p5), [#allocation3], %s1290_s15  ;;  %p2028_p10 = scmp.ne.s32.totalorder (!%p2027_p5), %s2022_s26, 0 }
  0x4f   : > { %1711 = dma.done.wait (%p2028_p10), %s255_s16, 512  }
  0x50   : > { %1713 = vsyncadd (%p2028_p10), %s255_s16, 4294966784  ;;  %p2029_p7 = scmp.ne.s32.totalorder %s2021_s25, 0 }
  0x52   : > { %1715 = dma.done.wait (%p2029_p7), [#allocation7], 640  }
  0x53   : > { %1717 = vsyncadd (%p2029_p7), [#allocation7], 4294966656 }
  0x54   : > { %1719 = dma.done.wait (%p2029_p7), [#allocation10], 16384  }
  0x55   : > { %1721 = vsyncadd (%p2029_p7), [#allocation10], 4294950912  ;;  %p1294_p12 = scmp.ne.s32.totalorder %s1740_s21, 0 }
  0x57   : > { %296 = sbr.rel (%p1294_p12) target bundleno = 94 (0x5e), region = 60 }
  0x5c   : > { %vm297_vm0 = vcmask 31744   ;;  %v1758_v0 = vmov 0.0  }
  0x5d   : > { %298 = vst.msk [vmem:[#allocation2] sm:$0xff] %vm297_vm0, %v1758_v0 }
  0x5e PF: > { %v300_v1 = vld [vmem:[%s1905_s17] sm:$0xf]  ;;  %vm308_vm1 = vcmask 1043456   ;;  %v302_v2 = vld [vmem:[%s1905_s17 + $0x8] sm:$0xf]  ;;  %v341_v17 = vlaneseq  ;;  %vm375_vm2 = vcmask 1041409  }
  0x5f   : > { %v309_v3 = vsel %vm308_vm1, %v300_v1, 0.0  ;;  %v315_v4 = vsel %vm308_vm1, %v302_v2, 0.0  ;;  %v301_v5 = vld [vmem:[%s1905_s17 + $0x4] sm:$0xf]  ;;  %v303_v6 = vld [vmem:[%s1905_s17 + $0xc] sm:$0xf] }
  0x60   : > { %310 = vadd.xlane.f32.xlu0 %v309_v3  ;;  %316 = vadd.xlane.f32.xlu1 %v315_v4  ;;  %v312_v7 = vsel %vm308_vm1, %v301_v5, 0.0  ;;  %v318_v8 = vsel %vm308_vm1, %v303_v6, 0.0  ;;  %v304_v9 = vld [vmem:[%s1905_s17 + $0x10] sm:$0xf]  ;;  %v305_v10 = vld [vmem:[%s1905_s17 + $0x14] sm:$0xf] }
  0x61   : > { %v321_v11 = vsel %vm308_vm1, %v304_v9, 0.0  ;;  %v324_v12 = vsel %vm308_vm1, %v305_v10, 0.0  ;;  %v306_v13 = vld [vmem:[%s1905_s17 + $0x18] sm:$0xf]  ;;  %v307_v14 = vld [vmem:[%s1905_s17 + $0x1c] sm:$0xf] }
  0x62   : > { %v327_v15 = vsel %vm308_vm1, %v306_v13, 0.0  ;;  %v330_v16 = vsel %vm308_vm1, %v307_v14, 0.0  ;;  %v342_v18 = vand.u32 127, %v341_v17  ;;  %v1936_v19 = vshrl.u32 %v341_v17, 7  ;;  %p1295_p8 = scmp.ne.s32.totalorder %s1740_s21, 1 }
  0x63   : > { %vm377_vm3 = vcmask 1042434   ;;  %vm379_vm4 = vcmask 1043459   ;;  %vm381_vm5 = vcmask 1044484   ;;  %vm383_vm6 = vcmask 1045509  }
  0x64   : > { %313 = vadd.xlane.f32.xlu0 %v312_v7  ;;  %319 = vadd.xlane.f32.xlu1 %v318_v8  ;;  %v345_v22 = vsub.s32 %v342_v18, %v1936_v19  ;;  %vm385_vm7 = vcmask 1046534   ;;  %vm387_vm8 = vcmask 1047559   ;;  %v299_v42 = vld [vmem:[#allocation2] sm:$0xff]  ;;  %vm391_vm9 = vcmask 31744  }
  0x68   : > { %322 = vadd.xlane.f32.xlu0 %v321_v11  ;;  %325 = vadd.xlane.f32.xlu1 %v324_v12 }
  0x6c   : > { %328 = vadd.xlane.f32.xlu0 %v327_v15  ;;  %331 = vadd.xlane.f32.xlu1 %v330_v16 }
  0xe9   : > { %v311_v20 = vpop.xlane.xlu0 %310  ;;  %v317_v21 = vpop.xlane.xlu1 %316 }
  0xea   : > { %v346_v25 = vrot.slane %v311_v20, %v345_v22  ;;  %v354_v28 = vrot.slane %v317_v21, %v345_v22 }
  0xed   : > { %v314_v23 = vpop.xlane.xlu0 %313  ;;  %v320_v24 = vpop.xlane.xlu1 %319 }
  0xee   : > { %v350_v26 = vrot.slane %v314_v23, %v345_v22  ;;  %v358_v27 = vrot.slane %v320_v24, %v345_v22 }
  0xf0   : > { %v376_v29 = vsel %vm375_vm2, %v350_v26, %v346_v25 }
  0xf1   : > { %v378_v30 = vsel %vm377_vm3, %v354_v28, %v376_v29  ;;  %v323_v31 = vpop.xlane.xlu0 %322  ;;  %v326_v32 = vpop.xlane.xlu1 %325 }
  0xf2   : > { %v380_v33 = vsel %vm379_vm4, %v358_v27, %v378_v30  ;;  %v362_v34 = vrot.slane %v323_v31, %v345_v22  ;;  %v366_v35 = vrot.slane %v326_v32, %v345_v22 }
  0xf4   : > { %v382_v36 = vsel %vm381_vm5, %v362_v34, %v380_v33 }
  0xf5   : > { %v329_v37 = vpop.xlane.xlu0 %328  ;;  %v332_v38 = vpop.xlane.xlu1 %331  ;;  %v384_v41 = vsel %vm383_vm6, %v366_v35, %v382_v36 }
  0xf6   : > { %v370_v39 = vrot.slane %v329_v37, %v345_v22  ;;  %v374_v40 = vrot.slane %v332_v38, %v345_v22 }
  0xf8   : > { %v386_v43 = vsel %vm385_vm7, %v370_v39, %v384_v41  ;;  %396 = sbr.rel (%p1295_p8) target bundleno = 697 (0x2b9), region = 64 }
  0xf9   : > { %v388_v44 = vsel %vm387_vm8, %v374_v40, %v386_v43 }
  0xfa   : > { %v390_v45 = vadd.f32 %v388_v44, %v299_v42 }
  0xfc   : > { %392 = vst.msk [vmem:[#allocation2] sm:$0xff] %vm391_vm9, %v390_v45 }
  0xfd   : > { %v399_v46 = vld [vmem:[#allocation6] sm:$0xff]  ;;  %v400_v47 = vld [vmem:[#allocation6 + $0x8] sm:$0xff]  ;;  %v1759_v51 = vmov 0.0   ;;  %v401_v53 = vld [vmem:[#allocation6 + $0x10] sm:$0xff] }
  0xfe   : > { %v449_v49 = vcombine.high %v399_v46, %v399_v46  ;;  %v450_v50 = vcombine.high %v400_v47, %v400_v47  ;;  %536 = vmatprep.mubr.f32.mxu0 %v1759_v51  ;;  %607 = vmatprep.mubr.f32.mxu1 %v1759_v51  ;;  %v402_v54 = vld [vmem:[#allocation6 + $0x18] sm:$0xff]  ;;  %v451_v55 = vcombine.high %v401_v53, %v401_v53  ;;  %v795_v57 = vld [vmem:[#allocation9 + $0xf8] sm:$0xff]  ;;  %v793_v1 = vld [vmem:[#allocation9 + $0xe8] sm:$0xff] }
  0xff   : > { %v452_v56 = vcombine.high %v402_v54, %v402_v54  ;;  %v827_v58 = vld [vmem:[#allocation9 + $0x1f8] sm:$0xff]  ;;  %v794_v61 = vld [vmem:[#allocation9 + $0xf0] sm:$0xff]  ;;  %v825_v2 = vld [vmem:[#allocation9 + $0x1e8] sm:$0xff] }
 0x100   : > { %1296 = vmatprep.subr.msk.mxu0 %vm308_vm1, %v449_v49  ;;  %1299 = vmatprep.subr.msk.mxu1 %vm308_vm1, %v450_v50  ;;  %v779_v59 = vld [vmem:[#allocation9 + $0x78] sm:$0xff]  ;;  %v826_v62 = vld [vmem:[#allocation9 + $0x1f0] sm:$0xff]  ;;  %v777_v3 = vld [vmem:[#allocation9 + $0x68] sm:$0xff] }
 0x101   : > { %1297 = vmatpush1.msk.msra.mxu0 %vm308_vm1, %v399_v46  ;;  %1300 = vmatpush1.msk.msra.mxu1 %vm308_vm1, %v400_v47  ;;  %v811_v60 = vld [vmem:[#allocation9 + $0x178] sm:$0xff]  ;;  %v778_v63 = vld [vmem:[#allocation9 + $0x70] sm:$0xff]  ;;  %v809_v4 = vld [vmem:[#allocation9 + $0x168] sm:$0xff] }
 0x102   : > { %1302 = vmatprep.subr.msk.mxu0 %vm308_vm1, %v451_v55  ;;  %1305 = vmatprep.subr.msk.mxu1 %vm308_vm1, %v452_v56  ;;  %v810_v0 = vld [vmem:[#allocation9 + $0x170] sm:$0xff]  ;;  %v792_v5 = vld [vmem:[#allocation9 + $0xe0] sm:$0xff]  ;;  %v791_v9 = vld [vmem:[#allocation9 + $0xd8] sm:$0xff] }
 0x103   : > { %v397_v48 = vld [vmem:[#allocation2] sm:$0xff]  ;;  %v824_v6 = vld [vmem:[#allocation9 + $0x1e0] sm:$0xff]  ;;  %v823_v10 = vld [vmem:[#allocation9 + $0x1d8] sm:$0xff] }
 0x104   : > { %v398_v52 = vmul.f32 0.00390625, %v397_v48  ;;  %v776_v7 = vld [vmem:[#allocation9 + $0x60] sm:$0xff]  ;;  %v775_v11 = vld [vmem:[#allocation9 + $0x58] sm:$0xff]  ;;  %v790_v13 = vld [vmem:[#allocation9 + $0xd0] sm:$0xff] }
 0x105   : > { %v808_v8 = vld [vmem:[#allocation9 + $0x160] sm:$0xff]  ;;  %v807_v12 = vld [vmem:[#allocation9 + $0x158] sm:$0xff]  ;;  %v822_v14 = vld [vmem:[#allocation9 + $0x1d0] sm:$0xff] }
 0x106   : > { %1298 = vmatmul.mubr.msk.f32.vlgmr.msra.gmra.mxu0 %vm391_vm9, %v398_v52  ;;  %1301 = vmatmul.mubr.msk.f32.vlgmr.msra.gmra.mxu1 %vm391_vm9, %v398_v52  ;;  %v774_v15 = vld [vmem:[#allocation9 + $0x50] sm:$0xff]  ;;  %v789_v17 = vld [vmem:[#allocation9 + $0xc8] sm:$0xff]  ;;  %v788_v22 = vld [vmem:[#allocation9 + $0xc0] sm:$0xff] }
 0x107   : > { %678 = vmatprep.mubr.f32.mxu0 %v1759_v51  ;;  %1303 = vmatpush1.msk.msra.mxu0 %vm308_vm1, %v401_v53  ;;  %v806_v16 = vld [vmem:[#allocation9 + $0x150] sm:$0xff]  ;;  %v821_v18 = vld [vmem:[#allocation9 + $0x1c8] sm:$0xff]  ;;  %v820_v23 = vld [vmem:[#allocation9 + $0x1c0] sm:$0xff] }
 0x108   : > { %1306 = vmatpush1.msk.msra.mxu1 %vm308_vm1, %v402_v54  ;;  %749 = vmatprep.mubr.f32.mxu1 %v1759_v51  ;;  %v773_v20 = vld [vmem:[#allocation9 + $0x48] sm:$0xff]  ;;  %v772_v24 = vld [vmem:[#allocation9 + $0x40] sm:$0xff]  ;;  %v787_v26 = vld [vmem:[#allocation9 + $0xb8] sm:$0xff] }
 0x109   : > { %1313 = vmatprep.subr.mxu0 %v795_v57  ;;  %1348 = vmatprep.subr.mxu1 %v827_v58  ;;  %v805_v21 = vld [vmem:[#allocation9 + $0x148] sm:$0xff]  ;;  %v804_v25 = vld [vmem:[#allocation9 + $0x140] sm:$0xff]  ;;  %v819_v27 = vld [vmem:[#allocation9 + $0x1b8] sm:$0xff] }
 0x10a   : > { %1304 = vmatmul.mubr.msk.f32.vlgmr.msra.gmra.mxu0 %vm391_vm9, %v398_v52  ;;  %1307 = vmatmul.mubr.msk.f32.vlgmr.msra.gmra.mxu1 %vm391_vm9, %v398_v52  ;;  %v771_v28 = vld [vmem:[#allocation9 + $0x38] sm:$0xff]  ;;  %v786_v30 = vld [vmem:[#allocation9 + $0xb0] sm:$0xff]  ;;  %v785_v34 = vld [vmem:[#allocation9 + $0xa8] sm:$0xff] }
 0x10b   : > { %1314 = vmatpush3.msra.mxu0 %v779_v59  ;;  %1349 = vmatpush3.msra.mxu1 %v811_v60  ;;  %v803_v29 = vld [vmem:[#allocation9 + $0x138] sm:$0xff]  ;;  %v818_v31 = vld [vmem:[#allocation9 + $0x1b0] sm:$0xff]  ;;  %v817_v35 = vld [vmem:[#allocation9 + $0x1a8] sm:$0xff]  ;;  %v415_v60 = vsub.s32 2, %v1936_v19 }
 0x10c   : > { %1315 = vmatprep.subr.mxu0 %v794_v61  ;;  %1350 = vmatprep.subr.mxu1 %v826_v62  ;;  %v770_v32 = vld [vmem:[#allocation9 + $0x30] sm:$0xff]  ;;  %v769_v36 = vld [vmem:[#allocation9 + $0x28] sm:$0xff]  ;;  %v784_v38 = vld [vmem:[#allocation9 + $0xa0] sm:$0xff]  ;;  %v407_v61 = vsub.s32 0, %v1936_v19 }
 0x10d   : > { %1316 = vmatpush3.msra.mxu0 %v778_v63  ;;  %1351 = vmatpush3.msra.mxu1 %v810_v0  ;;  %v802_v33 = vld [vmem:[#allocation9 + $0x130] sm:$0xff]  ;;  %v801_v37 = vld [vmem:[#allocation9 + $0x128] sm:$0xff]  ;;  %v816_v39 = vld [vmem:[#allocation9 + $0x1a0] sm:$0xff]  ;;  %v411_v63 = vsub.s32 1, %v1936_v19  ;;  %v419_v0 = vsub.s32 3, %v1936_v19 }
 0x10e   : > { %1317 = vmatprep.subr.mxu0 %v793_v1  ;;  %1352 = vmatprep.subr.mxu1 %v825_v2  ;;  %v768_v40 = vld [vmem:[#allocation9 + $0x20] sm:$0xff]  ;;  %v783_v42 = vld [vmem:[#allocation9 + $0x98] sm:$0xff]  ;;  %v782_v46 = vld [vmem:[#allocation9 + $0x90] sm:$0xff] }
 0x10f   : > { %1318 = vmatpush3.msra.mxu0 %v777_v3  ;;  %1353 = vmatpush3.msra.mxu1 %v809_v4  ;;  %v800_v41 = vld [vmem:[#allocation9 + $0x120] sm:$0xff]  ;;  %v815_v43 = vld [vmem:[#allocation9 + $0x198] sm:$0xff]  ;;  %v814_v47 = vld [vmem:[#allocation9 + $0x190] sm:$0xff] }
 0x110   : > { %1319 = vmatprep.subr.mxu0 %v792_v5  ;;  %1354 = vmatprep.subr.mxu1 %v824_v6  ;;  %v767_v44 = vld [vmem:[#allocation9 + $0x18] sm:$0xff]  ;;  %v766_v48 = vld [vmem:[#allocation9 + $0x10] sm:$0xff]  ;;  %v781_v50 = vld [vmem:[#allocation9 + $0x88] sm:$0xff] }
 0x111   : > { %1320 = vmatpush3.msra.mxu0 %v776_v7  ;;  %1355 = vmatpush3.msra.mxu1 %v808_v8  ;;  %v799_v45 = vld [vmem:[#allocation9 + $0x118] sm:$0xff]  ;;  %v798_v49 = vld [vmem:[#allocation9 + $0x110] sm:$0xff]  ;;  %v813_v51 = vld [vmem:[#allocation9 + $0x188] sm:$0xff] }
 0x112   : > { %1321 = vmatprep.subr.mxu0 %v791_v9  ;;  %1356 = vmatprep.subr.mxu1 %v823_v10  ;;  %v765_v52 = vld [vmem:[#allocation9 + $0x8] sm:$0xff]  ;;  %v780_v54 = vld [vmem:[#allocation9 + $0x80] sm:$0xff]  ;;  %v859_v58 = vld [vmem:[#allocation9 + $0x2f8] sm:$0xff] }
 0x113   : > { %1322 = vmatpush3.msra.mxu0 %v775_v11  ;;  %1357 = vmatpush3.msra.mxu1 %v807_v12  ;;  %v797_v53 = vld [vmem:[#allocation9 + $0x108] sm:$0xff]  ;;  %v812_v55 = vld [vmem:[#allocation9 + $0x180] sm:$0xff]  ;;  %v891_v59 = vld [vmem:[#allocation9 + $0x3f8] sm:$0xff] }
 0x114   : > { %1323 = vmatprep.subr.mxu0 %v790_v13  ;;  %1358 = vmatprep.subr.mxu1 %v822_v14  ;;  %v764_v56 = vld [vmem:[#allocation9] sm:$0xff]  ;;  %v1955_v62 = vld [vmem:[#allocation8] sm:$0xff] }
 0x115   : > { %1324 = vmatpush3.msra.mxu0 %v774_v15  ;;  %1359 = vmatpush3.msra.mxu1 %v806_v16  ;;  %v796_v57 = vld [vmem:[#allocation9 + $0x100] sm:$0xff]  ;;  %v416_v1 = vrot.slane %v1955_v62, %v415_v60  ;;  %v408_v2 = vrot.slane %v1955_v62, %v407_v61  ;;  %v412_v3 = vrot.slane %v1955_v62, %v411_v63  ;;  %v881_v60 = vld [vmem:[#allocation9 + $0x3a8] sm:$0xff]  ;;  %v431_v63 = vsub.s32 6, %v1936_v19 }
 0x116   : > { %1325 = vmatprep.subr.mxu0 %v789_v17  ;;  %1360 = vmatprep.subr.mxu1 %v821_v18  ;;  %v420_v4 = vrot.slane %v1955_v62, %v419_v0  ;;  %v843_v17 = vld [vmem:[#allocation9 + $0x278] sm:$0xff] }
 0x117   : > { %1326 = vmatpush3.msra.mxu0 %v773_v20  ;;  %1361 = vmatpush3.msra.mxu1 %v805_v21  ;;  %v875_v18 = vld [vmem:[#allocation9 + $0x378] sm:$0xff]  ;;  %v858_v20 = vld [vmem:[#allocation9 + $0x2f0] sm:$0xff] }
 0x118   : > { %1327 = vmatprep.subr.mxu0 %v788_v22  ;;  %1362 = vmatprep.subr.mxu1 %v820_v23  ;;  %v890_v21 = vld [vmem:[#allocation9 + $0x3f0] sm:$0xff] }
 0x119   : > { %1328 = vmatpush3.msra.mxu0 %v772_v24  ;;  %1363 = vmatpush3.msra.mxu1 %v804_v25  ;;  %v842_v22 = vld [vmem:[#allocation9 + $0x270] sm:$0xff]  ;;  %v857_v24 = vld [vmem:[#allocation9 + $0x2e8] sm:$0xff] }
 0x11a   : > { %1329 = vmatprep.subr.mxu0 %v787_v26  ;;  %1364 = vmatprep.subr.mxu1 %v819_v27  ;;  %v874_v23 = vld [vmem:[#allocation9 + $0x370] sm:$0xff]  ;;  %v889_v25 = vld [vmem:[#allocation9 + $0x3e8] sm:$0xff] }
 0x11b   : > { %1330 = vmatpush3.msra.mxu0 %v771_v28  ;;  %1365 = vmatpush3.msra.mxu1 %v803_v29  ;;  %v841_v26 = vld [vmem:[#allocation9 + $0x268] sm:$0xff]  ;;  %v856_v28 = vld [vmem:[#allocation9 + $0x2e0] sm:$0xff] }
 0x11c   : > { %1331 = vmatprep.subr.mxu0 %v786_v30  ;;  %1366 = vmatprep.subr.mxu1 %v818_v31  ;;  %v873_v27 = vld [vmem:[#allocation9 + $0x368] sm:$0xff]  ;;  %v888_v29 = vld [vmem:[#allocation9 + $0x3e0] sm:$0xff] }
 0x11d   : > { %1332 = vmatpush3.msra.mxu0 %v770_v32  ;;  %1367 = vmatpush3.msra.mxu1 %v802_v33  ;;  %v840_v30 = vld [vmem:[#allocation9 + $0x260] sm:$0xff]  ;;  %v855_v32 = vld [vmem:[#allocation9 + $0x2d8] sm:$0xff] }
 0x11e   : > { %1333 = vmatprep.subr.mxu0 %v785_v34  ;;  %1368 = vmatprep.subr.mxu1 %v817_v35  ;;  %v872_v31 = vld [vmem:[#allocation9 + $0x360] sm:$0xff]  ;;  %v887_v33 = vld [vmem:[#allocation9 + $0x3d8] sm:$0xff] }
 0x11f   : > { %1334 = vmatpush3.msra.mxu0 %v769_v36  ;;  %1369 = vmatpush3.msra.mxu1 %v801_v37  ;;  %v839_v34 = vld [vmem:[#allocation9 + $0x258] sm:$0xff]  ;;  %v854_v36 = vld [vmem:[#allocation9 + $0x2d0] sm:$0xff] }
 0x120   : > { %1335 = vmatprep.subr.mxu0 %v784_v38  ;;  %1370 = vmatprep.subr.mxu1 %v816_v39  ;;  %v871_v35 = vld [vmem:[#allocation9 + $0x358] sm:$0xff]  ;;  %v886_v37 = vld [vmem:[#allocation9 + $0x3d0] sm:$0xff] }
 0x121   : > { %1336 = vmatpush3.msra.mxu0 %v768_v40  ;;  %1371 = vmatpush3.msra.mxu1 %v800_v41  ;;  %v838_v38 = vld [vmem:[#allocation9 + $0x250] sm:$0xff]  ;;  %v853_v40 = vld [vmem:[#allocation9 + $0x2c8] sm:$0xff] }
 0x122   : > { %1337 = vmatprep.subr.mxu0 %v783_v42  ;;  %1372 = vmatprep.subr.mxu1 %v815_v43  ;;  %v870_v39 = vld [vmem:[#allocation9 + $0x350] sm:$0xff]  ;;  %v885_v41 = vld [vmem:[#allocation9 + $0x3c8] sm:$0xff] }
 0x123   : > { %1338 = vmatpush3.msra.mxu0 %v767_v44  ;;  %1373 = vmatpush3.msra.mxu1 %v799_v45  ;;  %v837_v42 = vld [vmem:[#allocation9 + $0x248] sm:$0xff]  ;;  %v852_v44 = vld [vmem:[#allocation9 + $0x2c0] sm:$0xff] }
 0x124   : > { %1339 = vmatprep.subr.mxu0 %v782_v46  ;;  %1374 = vmatprep.subr.mxu1 %v814_v47  ;;  %v869_v43 = vld [vmem:[#allocation9 + $0x348] sm:$0xff]  ;;  %v884_v45 = vld [vmem:[#allocation9 + $0x3c0] sm:$0xff] }
 0x125   : > { %1340 = vmatpush3.msra.mxu0 %v766_v48  ;;  %1375 = vmatpush3.msra.mxu1 %v798_v49  ;;  %v836_v46 = vld [vmem:[#allocation9 + $0x240] sm:$0xff]  ;;  %v851_v48 = vld [vmem:[#allocation9 + $0x2b8] sm:$0xff] }
 0x126   : > { %1341 = vmatprep.subr.mxu0 %v781_v50  ;;  %1376 = vmatprep.subr.mxu1 %v813_v51  ;;  %v868_v47 = vld [vmem:[#allocation9 + $0x340] sm:$0xff]  ;;  %v883_v49 = vld [vmem:[#allocation9 + $0x3b8] sm:$0xff]  ;;  %v427_v50 = vsub.s32 5, %v1936_v19 }
 0x127   : > { %1342 = vmatpush3.msra.mxu0 %v765_v52  ;;  %1377 = vmatpush3.msra.mxu1 %v797_v53  ;;  %v835_v51 = vld [vmem:[#allocation9 + $0x238] sm:$0xff] }
 0x128   : > { %1343 = vmatprep.subr.mxu0 %v780_v54  ;;  %1378 = vmatprep.subr.mxu1 %v812_v55  ;;  %v867_v52 = vld [vmem:[#allocation9 + $0x338] sm:$0xff]  ;;  %v850_v54 = vld [vmem:[#allocation9 + $0x2b0] sm:$0xff]  ;;  %v428_v61 = vrot.slane %v1955_v62, %v427_v50 }
 0x129   : > { %1344 = vmatpush3.msra.mxu0 %v764_v56  ;;  %1379 = vmatpush3.msra.mxu1 %v796_v57  ;;  %v882_v55 = vld [vmem:[#allocation9 + $0x3b0] sm:$0xff] }
 0x12a   : > { %1383 = vmatprep.subr.mxu0 %v859_v58  ;;  %1418 = vmatprep.subr.mxu1 %v891_v59  ;;  %v834_v56 = vld [vmem:[#allocation9 + $0x230] sm:$0xff]  ;;  %v435_v58 = vsub.s32 7, %v1936_v19  ;;  %v849_v59 = vld [vmem:[#allocation9 + $0x2a8] sm:$0xff] }
 0x12b   : > { %v866_v57 = vld [vmem:[#allocation9 + $0x330] sm:$0xff] }
 0x1c6   : > { %v538_v5 = vpop.f32.mrf.mxu0  ;;  %v609_v6 = vpop.f32.mrf.mxu1 }
 0x1c7   : > { %v610_v7 = vadd.f32 %v609_v6, %v416_v1  ;;  %v539_v8 = vadd.f32 %v538_v5, %v408_v2  ;;  %v833_v1 = vld [vmem:[#allocation9 + $0x228] sm:$0xff]  ;;  %v848_v5 = vld [vmem:[#allocation9 + $0x2a0] sm:$0xff] }
 0x1c8   : > { %v540_v9 = vpop.f32.mrf.mxu0  ;;  %v611_v10 = vpop.f32.mrf.mxu1  ;;  %v865_v2 = vld [vmem:[#allocation9 + $0x328] sm:$0xff]  ;;  %v880_v6 = vld [vmem:[#allocation9 + $0x3a0] sm:$0xff] }
 0x1c9   : > { %v541_v11 = vadd.f32 %v540_v9, %v412_v3  ;;  %v612_v12 = vadd.f32 %v611_v10, %v420_v4  ;;  %v758_v13 = vmax.f32 %v610_v7, 0.0  ;;  %v756_v16 = vmax.f32 %v539_v8, 0.0  ;;  %v832_v7 = vld [vmem:[#allocation9 + $0x220] sm:$0xff] }
 0x1ca   : > { %v680_v53 = vpop.f32.mrf.mxu0  ;;  %v751_v0 = vpop.f32.mrf.mxu1  ;;  %v423_v4 = vsub.s32 4, %v1936_v19  ;;  %v864_v8 = vld [vmem:[#allocation9 + $0x320] sm:$0xff]  ;;  %v436_v9 = vrot.slane %v1955_v62, %v435_v58  ;;  %v863_v19 = vld [vmem:[#allocation9 + $0x318] sm:$0xff] }
 0x1cb   : > { %v757_v14 = vmax.f32 %v541_v11, 0.0  ;;  %v759_v15 = vmax.f32 %v612_v12, 0.0  ;;  %v432_v11 = vrot.slane %v1955_v62, %v431_v63  ;;  %v847_v12 = vld [vmem:[#allocation9 + $0x298] sm:$0xff] }
 0x1cc   : > { %v682_v3 = vpop.f32.mrf.mxu0 }
 0x1cd   : > { %963 = vmatprep.mubr.f32.mxu0 %v757_v14  ;;  %1033 = vmatprep.mubr.f32.mxu1 %v759_v15  ;;  %v683_v10 = vadd.f32 %v682_v3, %v428_v61  ;;  %v753_v14 = vpop.f32.mrf.mxu1  ;;  %v831_v15 = vld [vmem:[#allocation9 + $0x218] sm:$0xff] }
 0x1ce   : > { %964 = vmatmul.mubr.f32.vlgmr.msra.gmra.mxu0 %v756_v16  ;;  %1034 = vmatmul.mubr.f32.vlgmr.msra.gmra.mxu1 %v758_v13  ;;  %v879_v13 = vld [vmem:[#allocation9 + $0x398] sm:$0xff]  ;;  %v424_v16 = vrot.slane %v1955_v62, %v423_v4  ;;  %v861_v62 = vld [vmem:[#allocation9 + $0x308] sm:$0xff] }
 0x1cf   : > { %1384 = vmatpush3.msra.mxu0 %v843_v17  ;;  %1419 = vmatpush3.msra.mxu1 %v875_v18  ;;  %v846_v17 = vld [vmem:[#allocation9 + $0x290] sm:$0xff] }
 0x1d0   : > { %1385 = vmatprep.subr.mxu0 %v858_v20  ;;  %1420 = vmatprep.subr.mxu1 %v890_v21  ;;  %v878_v18 = vld [vmem:[#allocation9 + $0x390] sm:$0xff]  ;;  %v754_v20 = vadd.f32 %v753_v14, %v436_v9 }
 0x1d1   : > { %1386 = vmatpush3.msra.mxu0 %v842_v22  ;;  %1421 = vmatpush3.msra.mxu1 %v874_v23  ;;  %v830_v21 = vld [vmem:[#allocation9 + $0x210] sm:$0xff]  ;;  %v761_v23 = vmax.f32 %v683_v10, 0.0 }
 0x1d2   : > { %1387 = vmatprep.subr.mxu0 %v857_v24  ;;  %1422 = vmatprep.subr.mxu1 %v889_v25  ;;  %v862_v22 = vld [vmem:[#allocation9 + $0x310] sm:$0xff]  ;;  %v752_v24 = vadd.f32 %v751_v0, %v432_v11  ;;  %v845_v25 = vld [vmem:[#allocation9 + $0x288] sm:$0xff] }
 0x1d3   : > { %1388 = vmatpush3.msra.mxu0 %v841_v26  ;;  %1423 = vmatpush3.msra.mxu1 %v873_v27  ;;  %v877_v26 = vld [vmem:[#allocation9 + $0x388] sm:$0xff] }
 0x1d4   : > { %1389 = vmatprep.subr.mxu0 %v856_v28  ;;  %1424 = vmatprep.subr.mxu1 %v888_v29  ;;  %v829_v27 = vld [vmem:[#allocation9 + $0x208] sm:$0xff]  ;;  %v681_v28 = vadd.f32 %v680_v53, %v424_v16  ;;  %v844_v29 = vld [vmem:[#allocation9 + $0x280] sm:$0xff] }
 0x1d5   : > { %1390 = vmatpush3.msra.mxu0 %v840_v30  ;;  %1425 = vmatpush3.msra.mxu1 %v872_v31  ;;  %v763_v30 = vmax.f32 %v754_v20, 0.0  ;;  %v876_v31 = vld [vmem:[#allocation9 + $0x380] sm:$0xff] }
 0x1d6   : > { %1391 = vmatprep.subr.mxu0 %v855_v32  ;;  %1426 = vmatprep.subr.mxu1 %v887_v33  ;;  %v828_v32 = vld [vmem:[#allocation9 + $0x200] sm:$0xff]  ;;  %v762_v33 = vmax.f32 %v752_v24, 0.0 }
 0x1d7   : > { %1392 = vmatpush3.msra.mxu0 %v839_v34  ;;  %1427 = vmatpush3.msra.mxu1 %v871_v35  ;;  %v860_v34 = vld [vmem:[#allocation9 + $0x300] sm:$0xff]  ;;  %v760_v35 = vmax.f32 %v681_v28, 0.0 }
 0x1d8   : > { %1393 = vmatprep.subr.mxu0 %v854_v36  ;;  %1428 = vmatprep.subr.mxu1 %v886_v37 }
 0x1d9   : > { %1394 = vmatpush3.msra.mxu0 %v838_v38  ;;  %1429 = vmatpush3.msra.mxu1 %v870_v39 }
 0x1da   : > { %1395 = vmatprep.subr.mxu0 %v853_v40  ;;  %1430 = vmatprep.subr.mxu1 %v885_v41  ;;  %v1308_v40 = vld [vmem:[%s2013_s4] ss:$0 sm:$0xff] }
 0x1db   : > { %1396 = vmatpush3.msra.mxu0 %v837_v42  ;;  %1431 = vmatpush3.msra.mxu1 %v869_v43 }
 0x1dc   : > { %1397 = vmatprep.subr.mxu0 %v852_v44  ;;  %1432 = vmatprep.subr.mxu1 %v884_v45 }
 0x1dd   : > { %1398 = vmatpush3.msra.mxu0 %v836_v46  ;;  %1433 = vmatpush3.msra.mxu1 %v868_v47 }
 0x1de   : > { %1399 = vmatprep.subr.mxu0 %v851_v48  ;;  %1434 = vmatprep.subr.mxu1 %v883_v49 }
 0x1df   : > { %1400 = vmatpush3.msra.mxu0 %v835_v51  ;;  %1435 = vmatpush3.msra.mxu1 %v867_v52 }
 0x1e0   : > { %1401 = vmatprep.subr.mxu0 %v850_v54  ;;  %1436 = vmatprep.subr.mxu1 %v882_v55 }
 0x1e1   : > { %1402 = vmatpush3.msra.mxu0 %v834_v56  ;;  %1437 = vmatpush3.msra.mxu1 %v866_v57 }
 0x1e2   : > { %1403 = vmatprep.subr.mxu0 %v849_v59  ;;  %1438 = vmatprep.subr.mxu1 %v881_v60 }
 0x1e3   : > { %1404 = vmatpush3.msra.mxu0 %v833_v1  ;;  %1439 = vmatpush3.msra.mxu1 %v865_v2 }
 0x1e4   : > { %1405 = vmatprep.subr.mxu0 %v848_v5  ;;  %1440 = vmatprep.subr.mxu1 %v880_v6 }
 0x1e5   : > { %1406 = vmatpush3.msra.mxu0 %v832_v7  ;;  %1441 = vmatpush3.msra.mxu1 %v864_v8 }
 0x1e6   : > { %1407 = vmatprep.subr.mxu0 %v847_v12  ;;  %1442 = vmatprep.subr.mxu1 %v879_v13 }
 0x1e7   : > { %1408 = vmatpush3.msra.mxu0 %v831_v15  ;;  %1443 = vmatpush3.msra.mxu1 %v863_v19 }
 0x1e8   : > { %1409 = vmatprep.subr.mxu0 %v846_v17  ;;  %1444 = vmatprep.subr.mxu1 %v878_v18 }
 0x1e9   : > { %1410 = vmatpush3.msra.mxu0 %v830_v21  ;;  %1445 = vmatpush3.msra.mxu1 %v862_v22 }
 0x1ea   : > { %1411 = vmatprep.subr.mxu0 %v845_v25  ;;  %1446 = vmatprep.subr.mxu1 %v877_v26 }
 0x1eb   : > { %1412 = vmatpush3.msra.mxu0 %v829_v27  ;;  %1103 = vmatprep.mubr.f32.mxu0 %v761_v23 }
 0x1ec   : > { %1447 = vmatpush3.msra.mxu1 %v861_v62  ;;  %1413 = vmatprep.subr.mxu0 %v844_v29 }
 0x1ed   : > { %1448 = vmatprep.subr.mxu1 %v876_v31  ;;  %1414 = vmatpush3.msra.mxu0 %v828_v32 }
 0x1ee   : > { %1449 = vmatpush3.msra.mxu1 %v860_v34  ;;  %1173 = vmatprep.mubr.f32.mxu1 %v763_v30 }
 0x1ef   : > { %1104 = vmatmul.mubr.f32.vlgmr.msra.gmra.mxu0 %v760_v35  ;;  %1174 = vmatmul.mubr.f32.vlgmr.msra.gmra.mxu1 %v762_v33 }
 0x28e   : > { %v1345_v36 = vpop.f32.mrf.mxu0  ;;  %v1380_v38 = vpop.f32.mrf.mxu1 }
 0x290   : > { %v1346_v37 = vpop.f32.mrf.mxu0  ;;  %v1381_v41 = vpop.f32.mrf.mxu1 }
 0x291   : > { %v1347_v39 = vadd.f32 %v1346_v37, %v1345_v36  ;;  %v1382_v45 = vadd.f32 %v1381_v41, %v1380_v38 }
 0x293   : > { %v966_v42 = vadd.f32 %v1347_v39, %v1308_v40 }
 0x295   : > { %v1036_v48 = vadd.f32 %v1382_v45, %v966_v42 }
 0x2af   : > { %v1415_v43 = vpop.f32.mrf.mxu0  ;;  %v1450_v44 = vpop.f32.mrf.mxu1 }
 0x2b1   : > { %v1416_v46 = vpop.f32.mrf.mxu0  ;;  %v1451_v47 = vpop.f32.mrf.mxu1 }
 0x2b2   : > { %v1417_v49 = vadd.f32 %v1416_v46, %v1415_v43  ;;  %v1452_v51 = vadd.f32 %v1451_v47, %v1450_v44 }
 0x2b4   : > { %v1106_v50 = vadd.f32 %v1417_v49, %v1036_v48 }
 0x2b6   : > { %v1176_v52 = vadd.f32 %v1452_v51, %v1106_v50 }
 0x2b8   : > { %1179 = vst [vmem:[#allocation11] sm:$0xff] %v1176_v52 }
 0x2b9 PF: > { %s2030_s25 = sadd.s32 4294967295, %s1748_s23   ;;  %s1760_s27 = smov [#allocation11]  }
 0x2ba   : > { %p1976_p13 = scmp.eq.s32.totalorder %s2030_s25, 1  ;;  %s1189_s8 = sshll.u32 %s1760_s27, 4  ;;  %s1190_s8 = int_to_ptr.vmem [resolvable:$true] %s1189_s8 }
 0x2bb   : > { %s1662_s18 = scalar_lea.vmem %s1190_s8, 128  ;;  %p1669_p4 = scmp.lt.s32.totalorder %s1190_s8, %s1190_s8 }
 0x2bc   : > { %p1663_p11 = scmp.ne.s32.totalorder %s1190_s8, %s1662_s18  ;;  %p1670_p2 = scmp.lt.s32.totalorder %s1662_s18, %s1662_s18 }
 0x2be   : > { %p1664_p0 = pnand %p1663_p11, %p1976_p13  ;;  %p1671_p3 = por %p1670_p2, %p1669_p4 }
 0x2c0   : > { %p1665_p1 = pneg %p1664_p0 }
 0x2c2   : > { %p1672_p6 = pnand %p1671_p3, %p1665_p1 }
 0x2c4   : > { %1675 = shalt.err (!%p1672_p6)
}
 0x2c5   : > { %1468 = dma.vmem_to_hbm [thread:$0]  (%p1976_p13), %s1190_s8, 128, %s2014_s5, [#allocation5]  }
 0x2c6   : > { %1723 = dma.done.wait (%p1976_p13), [#allocation5], 128  }
 0x2c7   : > { %1725 = vsyncadd (%p1976_p13), [#allocation5], 4294967168 }
 0x2c8 PF: > { %s21_s23 = sadd.s32 1, %s1748_s23   ;;  %s2032_s18 = smov %s1732_s19 }
 0x2c9   : > { %p18_p9 = scmp.ge.s32.totalorder %s21_s23, 4   ;;  %s2033_s19 = smov %s1736_s20 }
 0x2ca   : > { %s2034_s20 = smov %s1895_s13  ;;  %s2035_s21 = smov %s1744_s22 }
 0x2cb   : > { %s2036_s22 = smov %s2038_s9  ;;  %20 = sbr.rel (!%p18_p9) target bundleno = 7 (0x7), region = 98 }
 0x2d0   :  { %1202 = vsyncpa [#allocation4], 1 }
 0x2d1   :  { %1204 = vsyncpa [#allocation4 + $0x1], 1 }
 0x2d2   :  { %1205 = vsyncpa [#allocation7], 1 }
 0x2d3   :  { %1206 = vsyncpa [#allocation10], 1 }
 0x2d4   :  { %1207 = vsyncpa [#allocation5], 1 }
 0x2d5   :  { %1209 = vsyncpa [#allocation5 + $0x1], 1 }

</bundles_post_ra>
